<compile_context>
chip_gen: v5e
topology: v5e:2x2
jax: 0.10.0
libtpu: 0.0.40
codegen_flags: <defaults>
</compile_context>

<pallas_src>
import jax
import jax.numpy as jnp
from jax.experimental import pallas as pl
from jax.experimental.pallas import tpu as pltpu


# ------------------------------ helpers ------------------------------

def _pick_chunk(n, cap):
    """Largest chunk <= cap dividing n, preferring multiples of 8."""
    if n <= cap:
        return n
    for c in range(cap - cap % 8, 7, -8):
        if n % c == 0:
            return c
    for c in range(cap, 0, -1):
        if n % c == 0:
            return c
    return n


def _pick_batch_chunk(b, cap=64):
    if b <= cap:
        return b
    for c in range(cap - cap % 8, 7, -8):
        if b % c == 0:
            return c
    return b


# ---------------- Stage A: fused (fc0 + GRU input projection) GEMM ----------------

def _proj_kernel(x_ref, w_ref, b_ref, gi_ref):
    # x_ref: (B, TT, D) f32 tile of one stream's frames (all batches, one time tile).
    B, TT, D = x_ref.shape
    G = w_ref.shape[-1]
    x2 = x_ref[...].reshape(B * TT, D).astype(jnp.bfloat16)
    gi = jnp.dot(x2, w_ref[0], preferred_element_type=jnp.float32) + b_ref[0]
    gi = gi.astype(gi_ref.dtype).reshape(B, TT, G)
    # Store time-major (TT, B, 3H) so the recurrence reads contiguous (B,3H) per step.
    gi_ref[0] = pltpu.einshape("btg->tbg", gi)


def proj_pallas(x, wproj, bproj, *, Tv, time_tile=None):
    """x: (B, T, D) f32 with T = 2*Tv (video frames then audio frames per batch row).
    wproj: (2, D, 3H) bf16 folded weights, bproj: (2, 1, 3H) f32.
    Returns gi: (2, Tv, B, 3H) bf16 (time-major per stream)."""
    B, T, D = x.shape
    G = wproj.shape[-1]
    TT = time_tile if time_tile is not None else _pick_chunk(Tv, cap=128)
    assert Tv % TT == 0
    assert TT % 8 == 0 or TT == T, "Stage A time tile must be a multiple of 8"
    nM = Tv // TT

    return pl.pallas_call(
        _proj_kernel,
        out_shape=jax.ShapeDtypeStruct((2, Tv, B, G), jnp.bfloat16),
        grid=(2, nM),
        in_specs=[
            # time block for (stream s, tile m) starts at element s*Tv + m*TT
            pl.BlockSpec((B, TT, D), lambda s, m: (0, s * nM + m, 0)),
            pl.BlockSpec((1, D, G), lambda s, m: (s, 0, 0)),
            pl.BlockSpec((1, 1, G), lambda s, m: (s, 0, 0)),
        ],
        out_specs=pl.BlockSpec((1, TT, B, G), lambda s, m: (s, m, 0, 0)),
        compiler_params=pltpu.CompilerParams(
            dimension_semantics=("parallel", "parallel")),
    )(x, wproj, bproj)


# ------------------------- Stage B: GRU recurrence -------------------------

def _gru_kernel(gi_ref, whh_ref, bhh_ref, o_ref, h_ref):
    # gi_ref: (1, TC, B, 3H) bf16, time-major.  Only h @ Whh stays in the serial loop.
    TC = gi_ref.shape[1]
    H = h_ref.shape[-1]

    @pl.when(pl.program_id(1) == 0)           # start of each stream: h0 = zeros
    def _():
        h_ref[...] = jnp.zeros_like(h_ref)

    whh = whh_ref[0]                          # (H, 3H) bf16
    bhh = bhh_ref[0]                          # (1, 3H) f32

    def step(t, h):
        gi_t = gi_ref[0, t].astype(jnp.float32)                  # (B, 3H), order (r,z,n)
        gh = jnp.dot(h.astype(jnp.bfloat16), whh,
                     preferred_element_type=jnp.float32) + bhh   # (B, 3H) f32
        r = jax.nn.sigmoid(gi_t[:, 0:H] + gh[:, 0:H])
        z = jax.nn.sigmoid(gi_t[:, H:2 * H] + gh[:, H:2 * H])
        n = jnp.tanh(gi_t[:, 2 * H:3 * H] + r * gh[:, 2 * H:3 * H])
        h_new = (1.0 - z) * n + z * h                            # f32 carry
        o_ref[0, t] = h_new.astype(o_ref.dtype)                  # contiguous (B,H) store
        return h_new

    unroll = 4 if TC % 4 == 0 else (2 if TC % 2 == 0 else 1)
    h_last = jax.lax.fori_loop(0, TC, step, h_ref[...], unroll=unroll)
    h_ref[...] = h_last


def gru_pallas(gi, whh, bhh, *, time_chunk=None):
    """gi: (2, Tv, B, 3H) bf16. whh: (2, H, 3H) bf16, bhh: (2, 1, 3H) f32.
    Returns (2, Tv, B, H) bf16.  Stream axis is 'parallel' (independent recurrences)."""
    S, Tv, B, G = gi.shape
    H = whh.shape[1]
    TC = time_chunk if time_chunk is not None else _pick_chunk(Tv, cap=32)
    assert Tv % TC == 0

    return pl.pallas_call(
        _gru_kernel,
        out_shape=jax.ShapeDtypeStruct((S, Tv, B, H), jnp.bfloat16),
        grid=(S, Tv // TC),
        in_specs=[
            pl.BlockSpec((1, TC, B, G), lambda s, c: (s, c, 0, 0)),
            pl.BlockSpec((1, H, G), lambda s, c: (s, 0, 0)),
            pl.BlockSpec((1, 1, G), lambda s, c: (s, 0, 0)),
        ],
        out_specs=pl.BlockSpec((1, TC, B, H), lambda s, c: (s, c, 0, 0)),
        scratch_shapes=[pltpu.VMEM((B, H), jnp.float32)],
        compiler_params=pltpu.CompilerParams(
            dimension_semantics=("parallel", "arbitrary")),
        # TODO(synk): on single-TC v5e/v6e, stacking both streams into one (2B,H) step
        #             would double MXU row occupancy; v7x prefers the parallel axis.
    )(gi, whh, bhh)


# -------- Stage C: fused q1/ReLU/q2 + bilinear + fc1/ReLU/fc2 head, batch-tiled --------

def _post_kernel(h_ref, wq1_ref, bq1_ref, wq2_ref, bq2_ref, bw_ref,
                 w1t_ref, b1t_ref, w2t_ref, bilb_ref, b2_ref, o_ref):
    _, Tv, BT, H = h_ref.shape
    Q2 = bw_ref.shape[-1]

    def branch(k):                              # q1 -> ReLU -> (dropout=id) -> q2
        hk = h_ref[k].reshape(Tv * BT, H)       # bf16 rows, time-major (t, b)
        q1 = jnp.maximum(
            jnp.dot(hk, wq1_ref[k], preferred_element_type=jnp.float32)
            + bq1_ref[k], 0.0)                                   # (Tv*BT, Q1) f32
        return (jnp.dot(q1.astype(jnp.bfloat16), wq2_ref[k],
                        preferred_element_type=jnp.float32) + bq2_ref[k])

    vq2 = branch(0)                                              # (Tv*BT, Q2)
    aq2 = branch(1)
    # Bilinear(out_features=1): sum_ij v_i W_ij a_j + b
    u = jnp.dot(vq2.astype(jnp.bfloat16), bw_ref[...],
                preferred_element_type=jnp.float32) * aq2        # (Tv*BT, Q2)
    fus = jnp.sum(u.reshape(Tv, BT, Q2), axis=-1) + bilb_ref[0, 0]   # (Tv, BT)
    # Head per sample: fc1 over the Tv axis, ReLU, (dropout=id), fc2.
    Ft = jnp.transpose(fus)                                      # (BT, Tv)
    h1 = jnp.maximum(
        jnp.dot(Ft, w1t_ref[...], preferred_element_type=jnp.float32)
        + b1t_ref[...], 0.0)                                     # (BT, 16)
    sc = jnp.dot(h1, w2t_ref[...],
                 preferred_element_type=jnp.float32) + b2_ref[0, 0]   # (BT, 1)
    o_ref[...] = sc


def post_pallas(h_all, pp, *, batch_tile=None):
    """h_all: (2, Tv, B, H) bf16 GRU outputs. Returns score: (B,) f32."""
    S, Tv, B, H = h_all.shape
    BT = batch_tile if batch_tile is not None else _pick_batch_chunk(B, cap=64)
    assert B % BT == 0

    wq1, bq1 = pp["wq1"], pp["bq1"]              # (2,H,Q1) bf16, (2,1,Q1) f32
    wq2, bq2 = pp["wq2"], pp["bq2"]              # (2,Q1,Q2) bf16, (2,1,Q2) f32
    bilw, bilb = pp["bil_w"], pp["bil_b"]        # (Q2,Q2) bf16, (1,1) f32
    w1t, b1t = pp["fc1_wt"], pp["fc1_bt"]        # (Tv,16), (1,16) f32
    w2t, b2 = pp["fc2_wt"], pp["fc2_b"]          # (16,1), (1,1) f32

    out = pl.pallas_call(
        _post_kernel,
        out_shape=jax.ShapeDtypeStruct((B, 1), jnp.float32),
        grid=(B // BT,),
        in_specs=[
            pl.BlockSpec((S, Tv, BT, H), lambda i: (0, 0, i, 0)),
            pl.BlockSpec(wq1.shape, lambda i: (0, 0, 0)),
            pl.BlockSpec(bq1.shape, lambda i: (0, 0, 0)),
            pl.BlockSpec(wq2.shape, lambda i: (0, 0, 0)),
            pl.BlockSpec(bq2.shape, lambda i: (0, 0, 0)),
            pl.BlockSpec(bilw.shape, lambda i: (0, 0)),
            pl.BlockSpec(w1t.shape, lambda i: (0, 0)),
            pl.BlockSpec(b1t.shape, lambda i: (0, 0)),
            pl.BlockSpec(w2t.shape, lambda i: (0, 0)),
            pl.BlockSpec(memory_space=pltpu.MemorySpace.SMEM),   # bilinear bias (scalar)
            pl.BlockSpec(memory_space=pltpu.MemorySpace.SMEM),   # fc2 bias (scalar)
        ],
        out_specs=pl.BlockSpec((BT, 1), lambda i: (i, 0)),
        compiler_params=pltpu.CompilerParams(dimension_semantics=("parallel",)),
    )(h_all, wq1, bq1, wq2, bq2, bilw, w1t, b1t, w2t, bilb, b2)
    return out[:, 0]


# ---------------------------- parameters & glue ----------------------------

def init_params(key, input_size, reduced_size, hidden_size, min_len, q1_size, q2_size):
    D, R, H = input_size, reduced_size, hidden_size
    G = 3 * H
    ks = jax.random.split(key, 16)

    def u(k, shape, s):
        return jax.random.uniform(k, shape, jnp.float32, -s, s)

    sA = 1.0 / D ** 0.5
    sH = 1.0 / H ** 0.5
    sQ1 = 1.0 / H ** 0.5
    sQ2 = 1.0 / q1_size ** 0.5
    sB = 1.0 / q2_size ** 0.5
    s1 = 1.0 / min_len ** 0.5
    s2 = 1.0 / 16 ** 0.5

    p = {}
    # ANN fc0 for video (index 0) and audio (index 1), stored as (in, out).
    p["ann_w"] = u(ks[0], (2, D, R), sA)
    p["ann_b"] = u(ks[1], (2, 1, R), sA)
    # GRU weights, 3 gates fused along the last axis in torch order (r, z, n).
    p["wih"] = u(ks[2], (2, R, G), sH)
    p["bih"] = u(ks[3], (2, 1, G), sH)
    p["whh"] = u(ks[4], (2, H, G), sH)
    p["bhh"] = u(ks[5], (2, 1, G), sH)
    # q1 / q2 per stream.
    p["wq1"] = u(ks[6], (2, H, q1_size), sQ1)
    p["bq1"] = u(ks[7], (2, 1, q1_size), sQ1)
    p["wq2"] = u(ks[8], (2, q1_size, q2_size), sQ2)
    p["bq2"] = u(ks[9], (2, 1, q2_size), sQ2)
    # Bilinear(q2, q2, 1).
    p["bil_w"] = u(ks[10], (q2_size, q2_size), sB)
    p["bil_b"] = u(ks[11], (1, 1), sB)
    # Head (torch orientation: (out, in)).
    p["fc1_w"] = u(ks[12], (16, min_len), s1)
    p["fc1_b"] = u(ks[13], (16, 1), s1)
    p["fc2_w"] = u(ks[14], (1, 16), s2)
    p["fc2_b"] = u(ks[15], (1, 1), s2)
    return p


def prepare_params(p):
    """Offline folds + bf16 casts for the kernels (exact algebra, then quantize)."""
    wproj = jnp.einsum("sdr,srg->sdg", p["ann_w"], p["wih"])          # (2, D, 3H)
    bproj = jnp.einsum("sor,srg->sog", p["ann_b"], p["wih"]) + p["bih"]
    return {
        "wproj": wproj.astype(jnp.bfloat16),
        "bproj": bproj,                                               # f32
        "whh": p["whh"].astype(jnp.bfloat16), "bhh": p["bhh"],
        "wq1": p["wq1"].astype(jnp.bfloat16), "bq1": p["bq1"],
        "wq2": p["wq2"].astype(jnp.bfloat16), "bq2": p["bq2"],
        "bil_w": p["bil_w"].astype(jnp.bfloat16), "bil_b": p["bil_b"],
        "fc1_wt": jnp.transpose(p["fc1_w"]),                          # (min_len, 16)
        "fc1_bt": jnp.transpose(p["fc1_b"]),                          # (1, 16)
        "fc2_wt": jnp.transpose(p["fc2_w"]),                          # (16, 1)
        "fc2_b": p["fc2_b"],
    }


def my_model_forward(params, x, input_length, video_length):
    # NOTE: `input_length` is unused by the PyTorch forward as well; kept for parity.
    B, T, D = x.shape
    Tv = int(video_length)
    Ta = T - Tv
    assert Tv == Ta, "nn.Bilinear fusion requires video_length == audio_length"
    assert params["fc1_w"].shape[1] == Tv, "fc1 expects min_len == video_length"

    pp = prepare_params(params)

    # Stage A: folded fc0 + GRU input projection for both streams (single GEMM/tile).
    gi = proj_pallas(x, pp["wproj"], pp["bproj"], Tv=Tv)      # (2, Tv, B, 3H) bf16

    # Stage B: both GRU recurrences (stream axis parallel, zero initial state).
    h_all = gru_pallas(gi, pp["whh"], pp["bhh"])              # (2, Tv, B, H) bf16

    # Stage C: fused q1/ReLU/q2 + bilinear + per-sample head (batch-tiled).
    return post_pallas(h_all, pp)                             # (B,)


if __name__ == "__main__":
    # Small shapes consistent with the module's structural constraints:
    #   Bilinear needs equal video/audio lengths -> T = 2 * video_length
    #   fc1 = Linear(min_len, 16) needs video_length == min_len
    B = 2
    input_size = 32
    reduced_size = 16
    hidden_size = 16
    q1_size = 32        # analog of 512
    q2_size = 16        # analog of 128
    min_len = 8
    video_length = min_len
    T = 2 * video_length

    key = jax.random.PRNGKey(0)
    kx, kp = jax.random.split(key)
    x = jax.random.normal(kx, (B, T, input_size), jnp.float32)
    input_length = jnp.full((B,), T, jnp.int32)   # unused by forward, kept for parity
    params = init_params(kp, input_size, reduced_size, hidden_size,
                         min_len, q1_size, q2_size)

    score = my_model_forward(params, x, input_length, video_length)
    jax.block_until_ready(score)
    assert score.shape == (B,) and bool(jnp.all(jnp.isfinite(score)))
    print("KERNEL_OK")
</pallas_src>

<mosaic_0001>
module attributes {stable_mosaic.version = 11 : i64} {
  func.func @_proj_kernel(%arg0: i32, %arg1: i32, %arg2: memref<2x8x32xf32, #tpu.memory_space<vmem>>, %arg3: memref<1x32x48xbf16, #tpu.memory_space<vmem>>, %arg4: memref<1x1x48xf32, #tpu.memory_space<vmem>>, %arg5: memref<1x8x2x48xbf16, #tpu.memory_space<vmem>>) attributes {dimension_semantics = [#tpu.dimension_semantics<parallel>, #tpu.dimension_semantics<parallel>], iteration_bounds = array<i64: 2, 1>, scalar_prefetch = 0 : i64, scratch_operands = 0 : i64, tpu.core_type = #tpu.core_type<tc>, window_params = [{transform_indices = @transform_0, window_bounds = array<i64: 2, 8, 32>}, {transform_indices = @transform_1, window_bounds = array<i64: 1, 32, 48>}, {transform_indices = @transform_2, window_bounds = array<i64: 1, 1, 48>}, {transform_indices = @transform_3, window_bounds = array<i64: 1, 8, 2, 48>}]} {
    %c0 = arith.constant 0 : index
    %c0_0 = arith.constant 0 : index
    %c0_1 = arith.constant 0 : index
    %0 = vector.load %arg2[%c0, %c0_0, %c0_1] : memref<2x8x32xf32, #tpu.memory_space<vmem>>, vector<2x8x32xf32>
    %1 = vector.shape_cast %0 : vector<2x8x32xf32> to vector<16x32xf32>
    %2 = arith.truncf %1 : vector<16x32xf32> to vector<16x32xbf16>
    %c0_2 = arith.constant 0 : index
    %c0_3 = arith.constant 0 : index
    %c0_4 = arith.constant 0 : index
    %3 = vector.load %arg3[%c0_2, %c0_3, %c0_4] : memref<1x32x48xbf16, #tpu.memory_space<vmem>>, vector<1x32x48xbf16>
    %4 = vector.shape_cast %3 : vector<1x32x48xbf16> to vector<32x48xbf16>
    %cst = arith.constant dense<0.000000e+00> : vector<16x48xf32>
    %5 = tpu.matmul %2, %4, %cst {dimension_numbers = #tpu.dot_dimension_numbers<[1], [0], [0], [1], [0, 0, 1, 1], [], []>} : vector<16x32xbf16>, vector<32x48xbf16>, vector<16x48xf32> -> vector<16x48xf32>
    %c0_5 = arith.constant 0 : index
    %c0_6 = arith.constant 0 : index
    %c0_7 = arith.constant 0 : index
    %6 = vector.load %arg4[%c0_5, %c0_6, %c0_7] : memref<1x1x48xf32, #tpu.memory_space<vmem>>, vector<1x1x48xf32>
    %7 = vector.shape_cast %6 : vector<1x1x48xf32> to vector<1x48xf32>
    %8 = vector.broadcast %7 : vector<1x48xf32> to vector<16x48xf32>
    %9 = arith.addf %5, %8 : vector<16x48xf32>
    %10 = arith.truncf %9 : vector<16x48xf32> to vector<16x48xbf16>
    %11 = vector.shape_cast %10 : vector<16x48xbf16> to vector<2x8x48xbf16>
    %12 = tpu.transpose %11, [1, 0, 2] : vector<2x8x48xbf16> -> vector<8x2x48xbf16>
    %c0_8 = arith.constant 0 : index
    %c0_9 = arith.constant 0 : index
    %c0_10 = arith.constant 0 : index
    %c0_11 = arith.constant 0 : index
    %13 = vector.load %arg5[%c0_8, %c0_9, %c0_10, %c0_11] : memref<1x8x2x48xbf16, #tpu.memory_space<vmem>>, vector<1x8x2x48xbf16>
    %14 = vector.shape_cast %13 : vector<1x8x2x48xbf16> to vector<8x2x48xbf16>
    %15 = vector.shape_cast %12 : vector<8x2x48xbf16> to vector<1x8x2x48xbf16>
    tpu.vector_store %arg5[%c0_8, %c0_9, %c0_10, %c0_11], %15 {strides = array<i32>} : memref<1x8x2x48xbf16, #tpu.memory_space<vmem>>, vector<1x8x2x48xbf16>,
    return
  }
  func.func @transform_0(%arg0: i32, %arg1: i32) -> (i32, i32, i32) {
    %c1_i32 = arith.constant 1 : i32
    %0 = arith.muli %arg0, %c1_i32 : i32
    %1 = arith.addi %0, %arg1 : i32
    %c0_i32 = arith.constant 0 : i32
    %c0_i32_0 = arith.constant 0 : i32
    %c0_i32_1 = arith.constant 0 : i32
    return %c0_i32, %1, %c0_i32_0 : i32, i32, i32
  }
  func.func @transform_1(%arg0: i32, %arg1: i32) -> (i32, i32, i32) {
    %c0_i32 = arith.constant 0 : i32
    %c0_i32_0 = arith.constant 0 : i32
    %c0_i32_1 = arith.constant 0 : i32
    return %arg0, %c0_i32, %c0_i32_0 : i32, i32, i32
  }
  func.func @transform_2(%arg0: i32, %arg1: i32) -> (i32, i32, i32) {
    %c0_i32 = arith.constant 0 : i32
    %c0_i32_0 = arith.constant 0 : i32
    %c0_i32_1 = arith.constant 0 : i32
    return %arg0, %c0_i32, %c0_i32_0 : i32, i32, i32
  }
  func.func @transform_3(%arg0: i32, %arg1: i32) -> (i32, i32, i32, i32) {
    %c0_i32 = arith.constant 0 : i32
    %c0_i32_0 = arith.constant 0 : i32
    %c0_i32_1 = arith.constant 0 : i32
    return %arg0, %arg1, %c0_i32, %c0_i32_0 : i32, i32, i32, i32
  }
}

</mosaic_0001>

<bundles_post_ra>
// kernel: tpu_custom_call.1
= control target key start
LH: loop header
LB: loop body
LE: loop exit
PB: predicated region body
PF: predicated region fallthrough
CT: control target
= control target key end

     0   :  { %s1014_s0 = inlined_call_operand.hbm [shape: f32[2,16,32], index: 0, kind: input, shape index: {}]   ;;  %s1015_s1 = inlined_call_operand.hbm [shape: bf16[2,32,48], index: 1, kind: input, shape index: {}]   ;;  %s1016_s2 = inlined_call_operand.hbm [shape: f32[2,1,48], index: 2, kind: input, shape index: {}]   ;;  %s1017_s3 = inlined_call_operand.hbm [shape: bf16[2,8,2,48], index: 3, kind: output, shape index: {}]  }
   0x1   :  { %1022 = sst [smem:[#allocation16_spill]] %s1015_s1 }
   0x2   :  { %8 = vsyncpa [#allocation3], 0 }
   0x3   :  { %10 = vsyncpa [#allocation3 + $0x1], 0 }
   0x4   :  { %11 = vsyncpa [#allocation6], 0 }
   0x5   :  { %13 = vsyncpa [#allocation6 + $0x1], 0 }
   0x6   :  { %14 = vsyncpa [#allocation4], 0 }
   0x7   :  { %16 = vsyncpa [#allocation4 + $0x1], 0  ;;  %s839_s12 = smov 0   ;;  %s841_s13 = smov 0  }
   0x8   :  { %s843_s14 = smov 0   ;;  %s845_s15 = smov 0  }
   0x9   :  { %s847_s16 = smov 0   ;;  %s849_s17 = smov 0  }
   0xa LB: > { %1023 = sst [smem:[#allocation12_spill]] %s796_s14  ;;  %s870_s18 = sadd.s32 4294967295, %s808_s17   ;;  %s808_s17 = sphi %s849_s17, %s22_s17   ;;  %s804_s16 = sphi %s847_s16, %s1041_s16   ;;  %s800_s15 = sphi %s845_s15, %s1040_s15   ;;  %s796_s14 = sphi %s843_s14, %s1036_s14   ;;  %s792_s13 = sphi %s841_s13, %s1039_s13   ;;  %s788_s12 = sphi %s839_s12, %s1038_s12  }
   0xb   : > { %1024 = sst [smem:[#allocation13_spill]] %s808_s17  ;;  %s522_s19 = sadd.s32 4294967294, %s808_s17  }
   0xc   : > { %s34_s20 = sadd.s32 1, %s804_s16  ;;  %s43_s21 = sadd.s32 1, %s796_s14 }
   0xd   : > { %p36_p0 = scmp.ge.s32.totalorder %s34_s20, 2  ;;  %p50_p1 = scmp.ne.s32.totalorder %s796_s14, %s792_s13 }
   0xe   : > { %p51_p2 = scmp.eq.s32.totalorder %s808_s17, 0  ;;  %p56_p3 = scmp.ne.s32.totalorder %s792_s13, %s788_s12 }
   0xf   : > { %s1043_s20 = smov (%p36_p0, %s34_s20), 0  ;;  %p57_p5 = scmp.eq.s32.totalorder %s870_s18, 0 }
  0x10   : > { %1025 = sst [smem:[#allocation14_spill]] %s1043_s20  ;;  %p882_p4 = por %p51_p2, %p50_p1 }
  0x11   : > { %s40_s23 = ssub.s32 %s804_s16, %s1043_s20  ;;  %p134_p6 = scmp.eq.s32.totalorder %s870_s18, 1 }
  0x12   : > { %p41_p7 = scmp.eq.s32.totalorder %s40_s23, 0  ;;  %p890_p8 = por %p57_p5, %p56_p3 }
  0x13   : > { %p894_p9 = por %p134_p6, %p50_p1  ;;  %p140_p10 = scmp.eq.s32.totalorder %s522_s19, 1 }
  0x14   : > { %s899_s26 = scalar_select %p41_p7, %s796_s14, %s43_s21  }
  0x15   : > { %p901_p11 = por %p140_p10, %p56_p3  ;;  %p524_p12 = scmp.ge.s32.totalorder %s808_s17, 2 }
  0x16   : > { %1029 = sst [smem:[#allocation15_spill]] %s899_s26  ;;  %p572_p13 = scmp.lt.s32.totalorder %s808_s17, 2 }
  0x17   : > { %s908_s28 = sand.u32 1, %s796_s14   ;;  %s182_s30 = sand.u32 1, %s808_s17  }
  0x18   : > { %s525_s29 = sshll.u32 %s908_s28, 4  ;;  %p914_p0 = pnand %p572_p13, %p882_p4 }
  0x19   : > { %s164_s5 = scalar_lea.vmem [#allocation2], %s525_s29  ;;  %s547_s7 = sshll.u32 %s804_s16, 4 }
  0x1a   : > { %s172_s6 = sshll.u32 %s164_s5, 4  ;;  %s1032_s1 = sld [smem:[#allocation16_spill]]  ;;  %s173_s6 = int_to_ptr.vmem [resolvable:$true] %s172_s6 }
  0x1b   : > { %s186_s11 = scalar_lea.vmem [#allocation5], %s525_s29  ;;  %p530_p1 = scmp.ge.s32.totalorder %s808_s17, 1 }
  0x1c   : > { %s194_s19 = sshll.u32 %s186_s11, 4  ;;  %s183_s22 = scalar_lea.sflag [#allocation6], %s182_s30  ;;  %s195_s19 = int_to_ptr.vmem [resolvable:$true] %s194_s19 }
  0x1d   : > { %s810_s23 = smov 64   ;;  %s811_s5 = smov 4  }
  0x1e   : > { %p219_p2 = scmp.lt.s32.totalorder %s808_s17, 3  ;;  %s526_s29 = sshll.u32 %s804_s16, 3 }
  0x1f   : > { %s169_s9 = scalar_lea.hbm %s1014_s0, %s526_s29  ;;  %s161_s11 = scalar_lea.sflag [#allocation3], %s908_s28 }
  0x20   : > { %s191_s10 = scalar_lea.hbm %s1032_s1, %s547_s7  ;;  %p926_p3 = pnand %p530_p1, %p219_p2 }
  0x21   : > { %s192_s21 = sshll.u32 %s191_s10, 4  ;;  %s170_s10 = sshll.u32 %s169_s9, 4  ;;  %s193_s21 = int_to_ptr.hbm [resolvable:$true] %s192_s21  ;;  %s171_s10 = int_to_ptr.hbm [resolvable:$true] %s170_s10 }
  0x22   : > { %564 = dma.hbm_to_vmem [thread:$0]  (!%p914_p0), %s193_s21, 256, %s195_s19, %s183_s22, %s810_s23, %s810_s23, %s811_s5  }
  0x23   : > { %s812_s30 = smov 256   ;;  %s813_s1 = smov 128  }
  0x24   : > { %s814_s26 = smov 8   ;;  %s210_s23 = scalar_lea.hbm %s1016_s2, %s804_s16 }
  0x25   : > { %561 = dma.hbm_to_vmem [thread:$0]  (!%p914_p0), %s171_s10, 256, %s173_s6, %s161_s11, %s812_s30, %s813_s1, %s814_s26  }
  0x26   : > { %s212_s5 = sshll.u32 %s210_s23, 4  ;;  %s207_s14 = scalar_lea.vmem [#allocation7], %s908_s28  ;;  %s213_s5 = int_to_ptr.hbm [resolvable:$true] %s212_s5 }
  0x27   : > { %s214_s17 = sshll.u32 %s207_s14, 4  ;;  %223 = sbr.rel (%p926_p3) target bundleno = 212 (0xd4), region = 32  ;;  %s215_s17 = int_to_ptr.vmem [resolvable:$true] %s214_s17 }
  0x28   : > { %567 = dma.hbm_to_vmem [thread:$0]  (!%p914_p0), %s213_s5, 16, %s215_s17, %s183_s22  }
  0x29   : > { %s947_s29 = sand.u32 (!%p926_p3), 1, %s792_s13  }
  0x2a   : > { %s531_s1 = sshll.u32 (!%p926_p3), %s947_s29, 4  ;;  %s226_s26 = scalar_lea.sflag (!%p926_p3), [#allocation3], %s947_s29 }
  0x2b   : > { %s229_s6 = scalar_lea.vmem (!%p926_p3), [#allocation2], %s531_s1 }
  0x2c   : > { %775 = dma.done.wait (%p890_p8), %s226_s26, 256  }
  0x2d   : > { %777 = vsyncadd (%p890_p8), %s226_s26, 4294967040  ;;  %s235_s14 = sand.u32 1, %s870_s18   ;;  %s239_s20 = scalar_lea.vmem [#allocation5], %s531_s1 }
  0x2e   : > { %s236_s17 = scalar_lea.sflag [#allocation6], %s235_s14 }
  0x2f   : > { %779 = dma.done.wait (%p890_p8), %s236_s17, 272  }
  0x30   : > { %781 = vsyncadd (%p890_p8), %s236_s17, 4294967024  ;;  %v549_v0 = vld [vmem:[%s239_s20 + $0x8] sm:$0xff]  ;;  %s248_s28 = scalar_lea.vmem [#allocation7], %s947_s29  ;;  %v548_v1 = vld [vmem:[%s239_s20] sm:$0xff]  ;;  %vm307_vm0 = vcmask 261120   ;;  %s533_s18 = sshll.u32 %s947_s29, 3 }
  0x31   : > { %317 = vmatpush.bf16.msra.mxu0 %v549_v0  ;;  %v284_v2 = vld [vmem:[%s229_s6] sm:$0xff]  ;;  %v285_v3 = vld [vmem:[%s229_s6 + $0x8] sm:$0xff]  ;;  %v815_v8 = vmov 1983009808   ;;  %v816_v13 = vmov 1934713408  }
  0x32   : > { %v286_v4 = vpack.c.bf16 %v285_v3, %v284_v2  ;;  %v631_v6 = vld [vmem:[%s248_s28] ss:$0 sm:$0xff]  ;;  %v335_v9 = vunpack.c.l.s4 %v815_v8  ;;  %v342_v14 = vunpack.c.l.s4 %v816_v13  ;;  %s544_s24 = sshll.u32 %s800_s15, 3  ;;  %vm339_vm1 = vcmask 1047556   ;;  %s280_s8 = scalar_lea.vmem [#allocation8], %s533_s18 }
  0x33   : > { %vm372_vm2 = vcmask 385024   ;;  %s394_s7 = scalar_lea.hbm %s1017_s3, %s544_s24  ;;  %s395_s9 = sshll.u32 %s280_s8, 4  ;;  %s396_s9 = int_to_ptr.vmem [resolvable:$true] %s395_s9 }
  0x34   : > { %v336_v16 = vunpack.c.0.s8 %v335_v9  ;;  %v343_v20 = vunpack.c.0.s8 %v342_v14  ;;  %s397_s15 = sshll.u32 %s394_s7, 4  ;;  %s382_s10 = scalar_lea.sflag [#allocation4], %s947_s29  ;;  %s398_s15 = int_to_ptr.hbm [resolvable:$true] %s397_s15 }
  0x35   : > { %318 = vmatpush.bf16.msra.mxu0 %v548_v1  ;;  %s736_s11 = sshra.s32 %s398_s15, 4  ;;  %s742_s23 = scalar_lea.hbm %s1017_s3, 16  ;;  %s737_s11 = int_to_ptr.hbm [resolvable:$true] %s736_s11 }
  0x36   : > { %s738_s30 = scalar_lea.hbm %s737_s11, 8  ;;  %p743_p7 = scmp.lt.s32.totalorder %s737_s11, %s1017_s3 }
  0x37   : > { %p739_p4 = scmp.ne.s32.totalorder %s737_s11, %s738_s30  ;;  %p744_p8 = scmp.lt.s32.totalorder %s742_s23, %s738_s30 }
  0x38   : > { %542 = vmatmul.msk.bf16.vlgmr.msra.gmra.mxu0 %vm307_vm0, %v286_v4 }
  0x39   : > { %p740_p5 = pnand %p739_p4, %p894_p9  ;;  %p745_p10 = por %p744_p8, %p743_p7 }
  0x3b   : > { %p741_p6 = pneg %p740_p5 }
  0x3d   : > { %p746_p13 = pnand %p745_p10, %p741_p6 }
  0xb5   : > { %v320_v5 = vpop.f32.mrf.mxu0 }
  0xb6   : > { %v321_v7 = vadd.f32 %v631_v6, %v320_v5 }
  0xb8   : > { %v325_v11 = vpack.c.bf16 %v321_v7, %v321_v7 }
  0xba   : > { %v330_v17 = vshrl.u32 %v325_v11, 16 }
  0xbd   : > { %v322_v10 = vpop.f32.mrf.mxu0 }
  0xbe   : > { %v323_v12 = vadd.f32 %v631_v6, %v322_v10 }
  0xc0   : > { %v326_v15 = vpack.c.bf16 %v323_v12, %v323_v12 }
  0xc2   : > { %v329_v18 = vpack.i.b16 %v326_v15, %v325_v11  ;;  %v331_v19 = vshrl.u32 %v326_v15, 16 }
  0xc4   : > { %v332_v21 = vpack.i.b16 %v331_v19, %v330_v17  ;;  %v337_v22 = vperm.slane %v329_v18, %v336_v16 }
  0xc6   : > { %v338_v23 = vrot.slane %v337_v22, 4  ;;  %v344_v24 = vperm.slane %v337_v22, %v343_v20  ;;  %v357_v25 = vperm.slane %v332_v21, %v336_v16 }
  0xc8   : > { %v340_v26 = vsel %vm339_vm1, 0, %v338_v23  ;;  %v349_v27 = vrot.slane %v344_v24, 4  ;;  %v358_v28 = vrot.slane %v357_v25, 4  ;;  %v363_v29 = vperm.slane %v357_v25, %v343_v20  ;;  %373 = vst.msk [vmem:[%s280_s8] sm:$0x1] %vm372_vm2, %v344_v24 }
  0xc9   : > { %v348_v30 = vperm.slane %v340_v26, %v343_v20 }
  0xca   : > { %v350_v31 = vsel %vm339_vm1, 0, %v349_v27  ;;  %v359_v32 = vsel %vm339_vm1, 0, %v358_v28  ;;  %v368_v33 = vrot.slane %v363_v29, 4  ;;  %374 = vst.msk [vmem:[%s280_s8 + $0x1] sm:$0x1] %vm372_vm2, %v363_v29 }
  0xcb   : > { %v351_v34 = vrot.slane %v348_v30, 4  ;;  %v367_v35 = vperm.slane %v359_v32, %v343_v20  ;;  %375 = vst.msk [vmem:[%s280_s8 + $0x2] sm:$0x1] %vm372_vm2, %v350_v31 }
  0xcc   : > { %v369_v36 = vsel %vm339_vm1, 0, %v368_v33  ;;  %377 = vst.msk [vmem:[%s280_s8 + $0x4] sm:$0x1] %vm372_vm2, %v348_v30 }
  0xcd   : > { %v352_v37 = vsel %vm339_vm1, 0, %v351_v34  ;;  %v370_v38 = vrot.slane %v367_v35, 4  ;;  %376 = vst.msk [vmem:[%s280_s8 + $0x3] sm:$0x1] %vm372_vm2, %v369_v36 }
  0xce   : > { %378 = vst.msk [vmem:[%s280_s8 + $0x5] sm:$0x1] %vm372_vm2, %v367_v35 }
  0xcf   : > { %v371_v39 = vsel %vm339_vm1, 0, %v370_v38  ;;  %379 = vst.msk [vmem:[%s280_s8 + $0x6] sm:$0x1] %vm372_vm2, %v352_v37 }
  0xd0   : > { %380 = vst.msk [vmem:[%s280_s8 + $0x7] sm:$0x1] %vm372_vm2, %v371_v39 }
  0xd1   : > { %749 = shalt.err (!%p746_p13)
}
  0xd2   : > { %s817_s29 = smov 16   ;;  %s818_s26 = smov 1  }
  0xd3   : > { %556 = dma.vmem_to_hbm [thread:$0]  (%p894_p9), %s396_s9, 128, %s398_s15, %s382_s10, %s817_s29, %s817_s29, %s818_s26  }
  0xd4 PF: > { %s1034_s6 = sld [smem:[#allocation13_spill]]  ;;  %s412_s14 = sand.u32 1, %s788_s12  }
  0xd5   : > { %p569_p0 = pnand %p524_p12, %p901_p11  ;;  %s413_s17 = scalar_lea.sflag [#allocation4], %s412_s14 }
  0xd7   : > { %p570_p1 = pneg %p569_p0 }
  0xd9   : > { %783 = dma.done.wait (%p570_p1), %s413_s17, 128  }
  0xda   : > { %785 = vsyncadd (%p570_p1), %s413_s17, 4294967168  ;;  %s22_s17 = sadd.s32 1, %s1034_s6   ;;  %s1035_s20 = sld [smem:[#allocation12_spill]] }
  0xdb   : > { %p19_p2 = scmp.ge.s32.totalorder %s22_s17, 4   ;;  %s1036_s14 = sld [smem:[#allocation15_spill]] }
  0xdc   : > { %s1037_s25 = sld [smem:[#allocation14_spill]]  ;;  %s1038_s12 = smov %s792_s13 }
  0xdd   : > { %s1040_s15 = smov %s804_s16 }
  0xde   :  { %21 = sbr.rel (!%p19_p2) target bundleno = 10 (0xa), region = 101 }
  0xe0   : > { %s1039_s13 = smov %s1035_s20 }
  0xe2   : > { %s1041_s16 = smov %s1037_s25 }
  0xe3   :  { %419 = vsyncpa [#allocation3], 1 }
  0xe4   :  { %421 = vsyncpa [#allocation3 + $0x1], 1 }
  0xe5   :  { %422 = vsyncpa [#allocation6], 1 }
  0xe6   :  { %424 = vsyncpa [#allocation6 + $0x1], 1 }
  0xe7   :  { %425 = vsyncpa [#allocation4], 1 }
  0xe8   :  { %427 = vsyncpa [#allocation4 + $0x1], 1 }

</bundles_post_ra>
